<compile_context>
chip_gen: v7x
topology: tpu7x:2x2x1
jax: 0.10.0
libtpu: 0.0.40
codegen_flags: <defaults>
</compile_context>

<pallas_src>
import functools
import math

import jax
import jax.numpy as jnp
from jax.experimental import pallas as pl
from jax.experimental.pallas import tpu as pltpu

_SQRT2 = math.sqrt(2.0)
_LANE = 128
_PADOFF = 8  # sublane-aligned offset of the "real" rows inside the halo scratch
_VMEM = pl.BlockSpec(memory_space=pltpu.MemorySpace.VMEM)


def _gelu(x):
    # exact (erf-based) GELU, matching torch.nn.GELU() default
    return 0.5 * x * (1.0 + jax.lax.erf(x / _SQRT2))


# ------------------------------ fused kernel ---------------------------------
def _rcb_kernel(x_ref, w1_ref, s1_ref, t1_ref, w2_ref, s2_ref, t2_ref,
                o_ref, pad_ref, *, is_res, same_channels):
    """One batch element: conv1+BN+GELU -> conv2+BN+GELU -> optional residual / 1.414.

    x_ref  : (L, CP)     f32, channels zero-padded to CP (multiple of 128 lanes)
    w*_ref : (3*CP, CP)  bf16 im2col conv weights (zero rows/cols in the padding)
    s*/t*  : (1, CP)     f32 folded eval-mode BN scale / shift (padded lanes: s=1, t=0)
    o_ref  : (L, CP)     f32
    pad_ref: (L+16, CP)  f32 VMEM halo scratch
    """
    L, CP = x_ref.shape

    def conv_bn_gelu(rows_f32, w_ref, s_ref, t_ref):
        # halo padding is a free VMEM write: body rows go at an aligned offset,
        # the rows just outside stay zero from the initial fill.
        pad_ref[pl.ds(_PADOFF, L), :] = rows_f32
        # im2col: three shifted views concatenated along lanes -> ONE MXU matmul
        col = jnp.concatenate(
            [pad_ref[pl.ds(_PADOFF - 1, L), :],   # x[l-1]
             pad_ref[pl.ds(_PADOFF, L), :],       # x[l]
             pad_ref[pl.ds(_PADOFF + 1, L), :]],  # x[l+1]
            axis=-1).astype(jnp.bfloat16)         # (L, 3*CP)
        acc = jnp.dot(col, w_ref[...], preferred_element_type=jnp.float32)
        return _gelu(acc * s_ref[...] + t_ref[...])            # f32 epilogue

    pad_ref[...] = jnp.zeros_like(pad_ref)                      # halo rows stay 0 for both convs
    x = x_ref[...]
    h = conv_bn_gelu(x, w1_ref, s1_ref, t1_ref)                 # (L, CP) f32
    y = conv_bn_gelu(h, w2_ref, s2_ref, t2_ref)                 # (L, CP) f32

    if is_res:
        res = x if same_channels else h
        y = (res + y) / 1.414
    o_ref[...] = y


# ----------------------------- host-side wrapper ------------------------------
def residual_conv_block(x_ncl, kern_params, *, cout, same_channels, is_res):
    """x_ncl: (B, Cin, L) PyTorch layout; returns (B, Cout, L)."""
    B, cin, L = x_ncl.shape
    CP = kern_params["s1"].shape[-1]                            # lane-padded channel width

    # boundary layout glue only: NCL -> NLC, zero-pad channels to a 128-lane multiple
    x = jnp.transpose(x_ncl, (0, 2, 1)).astype(jnp.float32)
    x = jnp.pad(x, ((0, 0), (0, 0), (0, CP - cin)))

    kern = functools.partial(_rcb_kernel, is_res=is_res, same_channels=same_channels)
    act_spec = pl.BlockSpec((None, L, CP), lambda b: (b, 0, 0))
    out = pl.pallas_call(
        kern,
        grid=(B,),
        in_specs=[act_spec] + [_VMEM] * 6,
        out_specs=act_spec,
        out_shape=jax.ShapeDtypeStruct((B, L, CP), jnp.float32),
        scratch_shapes=[pltpu.VMEM((L + 2 * _PADOFF, CP), jnp.float32)],
        compiler_params=pltpu.CompilerParams(dimension_semantics=("parallel",)),
    )(x, kern_params["w1"], kern_params["s1"], kern_params["t1"],
      kern_params["w2"], kern_params["s2"], kern_params["t2"])

    return jnp.transpose(out[:, :, :cout], (0, 2, 1))           # back to (B, Cout, L)


# ----------------------------- parameter init ---------------------------------
def init_rcb_params(key, cin, cout, *, eps=1e-5):
    """Deterministic ResidualConvBlock params.

    Returns {"kern": lane-padded im2col arrays for the kernel,
             "raw":  torch-layout params for the pure-JAX reference}.
    """
    CP = _LANE * max(1, -(-max(cin, cout) // _LANE))

    def conv_bn(k, ci, co):
        kw, kb, kg, kbe, km, kv = jax.random.split(k, 6)
        return {
            "w": jax.random.normal(kw, (co, ci, 3), jnp.float32) / math.sqrt(ci * 3),
            "b": 0.05 * jax.random.normal(kb, (co,), jnp.float32),
            "gamma": 1.0 + 0.1 * jax.random.normal(kg, (co,), jnp.float32),
            "beta": 0.1 * jax.random.normal(kbe, (co,), jnp.float32),
            "mean": 0.1 * jax.random.normal(km, (co,), jnp.float32),
            "var": 1.0 + 0.1 * jnp.abs(jax.random.normal(kv, (co,), jnp.float32)),
        }

    def pack(raw, ci, co):
        # fold conv bias + eval-mode BN into per-channel scale / shift
        scale = raw["gamma"] / jnp.sqrt(raw["var"] + eps)
        shift = (raw["b"] - raw["mean"]) * scale + raw["beta"]
        # torch (Cout, Cin, K) -> im2col (K*CP, CP), zero-padded to lane-dense width
        wk = jnp.transpose(raw["w"], (2, 1, 0))                         # (3, Cin, Cout)
        wp = jnp.zeros((3, CP, CP), jnp.float32).at[:, :ci, :co].set(wk)
        return (wp.reshape(3 * CP, CP).astype(jnp.bfloat16),
                jnp.ones((1, CP), jnp.float32).at[0, :co].set(scale),   # padded scale = 1
                jnp.zeros((1, CP), jnp.float32).at[0, :co].set(shift))  # padded shift = 0 -> gelu(0)=0

    k1, k2 = jax.random.split(key)
    raw1, raw2 = conv_bn(k1, cin, cout), conv_bn(k2, cout, cout)
    w1, s1, t1 = pack(raw1, cin, cout)
    w2, s2, t2 = pack(raw2, cout, cout)
    return {"kern": {"w1": w1, "s1": s1, "t1": t1, "w2": w2, "s2": s2, "t2": t2},
            "raw": {"c1": raw1, "c2": raw2, "eps": eps}}


# ----------------------------- pure-JAX reference ------------------------------
def residual_conv_block_reference(x_ncl, raw, *, is_res, same_channels):
    """f32 reference with torch Conv1d/eval-mode BatchNorm1d/GELU semantics."""
    eps = raw["eps"]

    def conv_bn_gelu(x, c):
        _, _, L = x.shape
        xt = jnp.transpose(x, (0, 2, 1))                                # (B, L, Cin)
        xpad = jnp.pad(xt, ((0, 0), (1, 1), (0, 0)))
        wk = jnp.transpose(c["w"], (2, 1, 0))                           # (3, Cin, Cout)
        y = sum(jnp.einsum("blc,cd->bld", xpad[:, k:k + L, :], wk[k],
                           precision=jax.lax.Precision.HIGHEST) for k in range(3))
        y = y + c["b"][None, None, :]
        y = (y - c["mean"]) / jnp.sqrt(c["var"] + eps) * c["gamma"] + c["beta"]
        y = 0.5 * y * (1.0 + jax.lax.erf(y / _SQRT2))
        return jnp.transpose(y, (0, 2, 1))

    x1 = conv_bn_gelu(x_ncl, raw["c1"])
    x2 = conv_bn_gelu(x1, raw["c2"])
    if is_res:
        return ((x_ncl if same_channels else x1) + x2) / 1.414
    return x2


# ----------------------------------- main --------------------------------------
if __name__ == "__main__":
    B, L = 2, 28
    key = jax.random.PRNGKey(0)
    kp1, kp2, kx1, kx2 = jax.random.split(key, 4)

    x_4 = jax.random.normal(kx1, (B, 4, L), jnp.float32)
    x_32 = jax.random.normal(kx2, (B, 32, L), jnp.float32)
    cases = [
        ("cin=4  cout=32 is_res=True ", 4, 32, True, kp1, x_4),
        ("cin=32 cout=32 is_res=True ", 32, 32, True, kp2, x_32),
        ("cin=32 cout=32 is_res=False", 32, 32, False, kp2, x_32),
    ]

    for name, cin, cout, is_res, kp, x in cases:
        params = init_rcb_params(kp, cin, cout)
        same = cin == cout
        fwd = jax.jit(functools.partial(residual_conv_block,
                                        cout=cout, same_channels=same, is_res=is_res))
        out = jax.block_until_ready(fwd(x, params["kern"]))
        assert out.shape == (B, cout, L), (name, out.shape)
        assert bool(jnp.all(jnp.isfinite(out))), name

        ref = residual_conv_block_reference(x, params["raw"], is_res=is_res, same_channels=same)
        err = float(jnp.max(jnp.abs(out - ref)))
        # bf16 matmul inputs vs. f32 reference -> small numerical slack
        assert err < 1e-1, (name, err)

    print("KERNEL_OK")
</pallas_src>

<mosaic_0001>
module attributes {stable_mosaic.version = 11 : i64} {
  func.func @_rcb_kernel(%arg0: i32, %arg1: memref<1x28x128xf32, #tpu.memory_space<vmem>>, %arg2: memref<384x128xbf16, #tpu.memory_space<vmem>>, %arg3: memref<1x128xf32, #tpu.memory_space<vmem>>, %arg4: memref<1x128xf32, #tpu.memory_space<vmem>>, %arg5: memref<384x128xbf16, #tpu.memory_space<vmem>>, %arg6: memref<1x128xf32, #tpu.memory_space<vmem>>, %arg7: memref<1x128xf32, #tpu.memory_space<vmem>>, %arg8: memref<1x28x128xf32, #tpu.memory_space<vmem>>, %arg9: memref<44x128xf32, #tpu.memory_space<vmem>>) attributes {dimension_semantics = [#tpu.dimension_semantics<parallel>], iteration_bounds = array<i64: 2>, scalar_prefetch = 0 : i64, scratch_operands = 1 : i64, tpu.core_type = #tpu.core_type<tc>, window_params = [{transform_indices = @transform_0, window_bounds = array<i64: 1, 28, 128>}, {pipeline_mode = #tpu.pipeline_mode<synchronous>, transform_indices = @transform_1, window_bounds = array<i64: 384, 128>}, {pipeline_mode = #tpu.pipeline_mode<synchronous>, transform_indices = @transform_2, window_bounds = array<i64: 1, 128>}, {pipeline_mode = #tpu.pipeline_mode<synchronous>, transform_indices = @transform_3, window_bounds = array<i64: 1, 128>}, {pipeline_mode = #tpu.pipeline_mode<synchronous>, transform_indices = @transform_4, window_bounds = array<i64: 384, 128>}, {pipeline_mode = #tpu.pipeline_mode<synchronous>, transform_indices = @transform_5, window_bounds = array<i64: 1, 128>}, {pipeline_mode = #tpu.pipeline_mode<synchronous>, transform_indices = @transform_6, window_bounds = array<i64: 1, 128>}, {transform_indices = @transform_7, window_bounds = array<i64: 1, 28, 128>}]} {
    %cst = arith.constant 0.000000e+00 : f32
    %0 = vector.broadcast %cst : f32 to vector<44x128xf32>
    %c0 = arith.constant 0 : index
    %c0_0 = arith.constant 0 : index
    %1 = vector.load %arg9[%c0, %c0_0] : memref<44x128xf32, #tpu.memory_space<vmem>>, vector<44x128xf32>
    tpu.vector_store %arg9[%c0, %c0_0], %0 {strides = array<i32>} : memref<44x128xf32, #tpu.memory_space<vmem>>, vector<44x128xf32>,
    %c0_1 = arith.constant 0 : index
    %c0_2 = arith.constant 0 : index
    %c0_3 = arith.constant 0 : index
    %2 = vector.load %arg1[%c0_1, %c0_2, %c0_3] : memref<1x28x128xf32, #tpu.memory_space<vmem>>, vector<1x28x128xf32>
    %3 = vector.shape_cast %2 : vector<1x28x128xf32> to vector<28x128xf32>
    %c8 = arith.constant 8 : index
    %c0_4 = arith.constant 0 : index
    %4 = vector.load %arg9[%c8, %c0_4] : memref<44x128xf32, #tpu.memory_space<vmem>>, vector<28x128xf32>
    tpu.vector_store %arg9[%c8, %c0_4], %3 {strides = array<i32>} : memref<44x128xf32, #tpu.memory_space<vmem>>, vector<28x128xf32>,
    %c7 = arith.constant 7 : index
    %c0_5 = arith.constant 0 : index
    %5 = vector.load %arg9[%c7, %c0_5] : memref<44x128xf32, #tpu.memory_space<vmem>>, vector<28x128xf32>
    %c8_6 = arith.constant 8 : index
    %c0_7 = arith.constant 0 : index
    %6 = vector.load %arg9[%c8_6, %c0_7] : memref<44x128xf32, #tpu.memory_space<vmem>>, vector<28x128xf32>
    %c9 = arith.constant 9 : index
    %c0_8 = arith.constant 0 : index
    %7 = vector.load %arg9[%c9, %c0_8] : memref<44x128xf32, #tpu.memory_space<vmem>>, vector<28x128xf32>
    %8 = tpu.concatenate %5, %6, %7 in 1 : vector<28x128xf32>, vector<28x128xf32>, vector<28x128xf32> -> vector<28x384xf32>
    %9 = arith.truncf %8 : vector<28x384xf32> to vector<28x384xbf16>
    %c0_9 = arith.constant 0 : index
    %c0_10 = arith.constant 0 : index
    %10 = vector.load %arg2[%c0_9, %c0_10] : memref<384x128xbf16, #tpu.memory_space<vmem>>, vector<384x128xbf16>
    %cst_11 = arith.constant dense<0.000000e+00> : vector<28x128xf32>
    %11 = tpu.matmul %9, %10, %cst_11 {dimension_numbers = #tpu.dot_dimension_numbers<[1], [0], [0], [1], [0, 0, 1, 1], [], []>} : vector<28x384xbf16>, vector<384x128xbf16>, vector<28x128xf32> -> vector<28x128xf32>
    %c0_12 = arith.constant 0 : index
    %c0_13 = arith.constant 0 : index
    %12 = vector.load %arg3[%c0_12, %c0_13] : memref<1x128xf32, #tpu.memory_space<vmem>>, vector<1x128xf32>
    %13 = vector.broadcast %12 : vector<1x128xf32> to vector<28x128xf32>
    %14 = arith.mulf %11, %13 : vector<28x128xf32>
    %c0_14 = arith.constant 0 : index
    %c0_15 = arith.constant 0 : index
    %15 = vector.load %arg4[%c0_14, %c0_15] : memref<1x128xf32, #tpu.memory_space<vmem>>, vector<1x128xf32>
    %16 = vector.broadcast %15 : vector<1x128xf32> to vector<28x128xf32>
    %17 = arith.addf %14, %16 : vector<28x128xf32>
    %cst_16 = arith.constant 5.000000e-01 : f32
    %18 = vector.broadcast %cst_16 : f32 to vector<28x128xf32>
    %19 = arith.mulf %18, %17 : vector<28x128xf32>
    %cst_17 = arith.constant 1.41421354 : f32
    %20 = vector.broadcast %cst_17 : f32 to vector<28x128xf32>
    %21 = arith.divf %17, %20 : vector<28x128xf32>
    %22 = math.erf %21 : vector<28x128xf32>
    %cst_18 = arith.constant 1.000000e+00 : f32
    %23 = vector.broadcast %cst_18 : f32 to vector<28x128xf32>
    %24 = arith.addf %23, %22 : vector<28x128xf32>
    %25 = arith.mulf %19, %24 : vector<28x128xf32>
    %c8_19 = arith.constant 8 : index
    %c0_20 = arith.constant 0 : index
    %26 = vector.load %arg9[%c8_19, %c0_20] : memref<44x128xf32, #tpu.memory_space<vmem>>, vector<28x128xf32>
    tpu.vector_store %arg9[%c8_19, %c0_20], %25 {strides = array<i32>} : memref<44x128xf32, #tpu.memory_space<vmem>>, vector<28x128xf32>,
    %c7_21 = arith.constant 7 : index
    %c0_22 = arith.constant 0 : index
    %27 = vector.load %arg9[%c7_21, %c0_22] : memref<44x128xf32, #tpu.memory_space<vmem>>, vector<28x128xf32>
    %c8_23 = arith.constant 8 : index
    %c0_24 = arith.constant 0 : index
    %28 = vector.load %arg9[%c8_23, %c0_24] : memref<44x128xf32, #tpu.memory_space<vmem>>, vector<28x128xf32>
    %c9_25 = arith.constant 9 : index
    %c0_26 = arith.constant 0 : index
    %29 = vector.load %arg9[%c9_25, %c0_26] : memref<44x128xf32, #tpu.memory_space<vmem>>, vector<28x128xf32>
    %30 = tpu.concatenate %27, %28, %29 in 1 : vector<28x128xf32>, vector<28x128xf32>, vector<28x128xf32> -> vector<28x384xf32>
    %31 = arith.truncf %30 : vector<28x384xf32> to vector<28x384xbf16>
    %c0_27 = arith.constant 0 : index
    %c0_28 = arith.constant 0 : index
    %32 = vector.load %arg5[%c0_27, %c0_28] : memref<384x128xbf16, #tpu.memory_space<vmem>>, vector<384x128xbf16>
    %cst_29 = arith.constant dense<0.000000e+00> : vector<28x128xf32>
    %33 = tpu.matmul %31, %32, %cst_29 {dimension_numbers = #tpu.dot_dimension_numbers<[1], [0], [0], [1], [0, 0, 1, 1], [], []>} : vector<28x384xbf16>, vector<384x128xbf16>, vector<28x128xf32> -> vector<28x128xf32>
    %c0_30 = arith.constant 0 : index
    %c0_31 = arith.constant 0 : index
    %34 = vector.load %arg6[%c0_30, %c0_31] : memref<1x128xf32, #tpu.memory_space<vmem>>, vector<1x128xf32>
    %35 = vector.broadcast %34 : vector<1x128xf32> to vector<28x128xf32>
    %36 = arith.mulf %33, %35 : vector<28x128xf32>
    %c0_32 = arith.constant 0 : index
    %c0_33 = arith.constant 0 : index
    %37 = vector.load %arg7[%c0_32, %c0_33] : memref<1x128xf32, #tpu.memory_space<vmem>>, vector<1x128xf32>
    %38 = vector.broadcast %37 : vector<1x128xf32> to vector<28x128xf32>
    %39 = arith.addf %36, %38 : vector<28x128xf32>
    %cst_34 = arith.constant 5.000000e-01 : f32
    %40 = vector.broadcast %cst_34 : f32 to vector<28x128xf32>
    %41 = arith.mulf %40, %39 : vector<28x128xf32>
    %cst_35 = arith.constant 1.41421354 : f32
    %42 = vector.broadcast %cst_35 : f32 to vector<28x128xf32>
    %43 = arith.divf %39, %42 : vector<28x128xf32>
    %44 = math.erf %43 : vector<28x128xf32>
    %cst_36 = arith.constant 1.000000e+00 : f32
    %45 = vector.broadcast %cst_36 : f32 to vector<28x128xf32>
    %46 = arith.addf %45, %44 : vector<28x128xf32>
    %47 = arith.mulf %41, %46 : vector<28x128xf32>
    %48 = arith.addf %25, %47 : vector<28x128xf32>
    %cst_37 = arith.constant 1.414000e+00 : f32
    %49 = vector.broadcast %cst_37 : f32 to vector<28x128xf32>
    %50 = arith.divf %48, %49 : vector<28x128xf32>
    %c0_38 = arith.constant 0 : index
    %c0_39 = arith.constant 0 : index
    %c0_40 = arith.constant 0 : index
    %51 = vector.load %arg8[%c0_38, %c0_39, %c0_40] : memref<1x28x128xf32, #tpu.memory_space<vmem>>, vector<1x28x128xf32>
    %52 = vector.shape_cast %51 : vector<1x28x128xf32> to vector<28x128xf32>
    %53 = vector.shape_cast %50 : vector<28x128xf32> to vector<1x28x128xf32>
    tpu.vector_store %arg8[%c0_38, %c0_39, %c0_40], %53 {strides = array<i32>} : memref<1x28x128xf32, #tpu.memory_space<vmem>>, vector<1x28x128xf32>,
    return
  }
  func.func @transform_0(%arg0: i32) -> (i32, i32, i32) {
    %c0_i32 = arith.constant 0 : i32
    %c0_i32_0 = arith.constant 0 : i32
    %c0_i32_1 = arith.constant 0 : i32
    return %arg0, %c0_i32, %c0_i32_0 : i32, i32, i32
  }
  func.func @transform_1(%arg0: i32) -> (i32, i32) {
    %c0_i32 = arith.constant 0 : i32
    %c0_i32_0 = arith.constant 0 : i32
    %c0_i32_1 = arith.constant 0 : i32
    return %c0_i32, %c0_i32_0 : i32, i32
  }
  func.func @transform_2(%arg0: i32) -> (i32, i32) {
    %c0_i32 = arith.constant 0 : i32
    %c0_i32_0 = arith.constant 0 : i32
    %c0_i32_1 = arith.constant 0 : i32
    return %c0_i32, %c0_i32_0 : i32, i32
  }
  func.func @transform_3(%arg0: i32) -> (i32, i32) {
    %c0_i32 = arith.constant 0 : i32
    %c0_i32_0 = arith.constant 0 : i32
    %c0_i32_1 = arith.constant 0 : i32
    return %c0_i32, %c0_i32_0 : i32, i32
  }
  func.func @transform_4(%arg0: i32) -> (i32, i32) {
    %c0_i32 = arith.constant 0 : i32
    %c0_i32_0 = arith.constant 0 : i32
    %c0_i32_1 = arith.constant 0 : i32
    return %c0_i32, %c0_i32_0 : i32, i32
  }
  func.func @transform_5(%arg0: i32) -> (i32, i32) {
    %c0_i32 = arith.constant 0 : i32
    %c0_i32_0 = arith.constant 0 : i32
    %c0_i32_1 = arith.constant 0 : i32
    return %c0_i32, %c0_i32_0 : i32, i32
  }
  func.func @transform_6(%arg0: i32) -> (i32, i32) {
    %c0_i32 = arith.constant 0 : i32
    %c0_i32_0 = arith.constant 0 : i32
    %c0_i32_1 = arith.constant 0 : i32
    return %c0_i32, %c0_i32_0 : i32, i32
  }
  func.func @transform_7(%arg0: i32) -> (i32, i32, i32) {
    %c0_i32 = arith.constant 0 : i32
    %c0_i32_0 = arith.constant 0 : i32
    %c0_i32_1 = arith.constant 0 : i32
    return %arg0, %c0_i32, %c0_i32_0 : i32, i32, i32
  }
}

</mosaic_0001>

<bundles_post_ra>
// kernel: residual_conv_block.1
= control target key start
LH: loop header
LB: loop body
LE: loop exit
PB: predicated region body
PF: predicated region fallthrough
CT: control target
= control target key end

     0   :  { %12 = vsyncpa [#allocation4], 0  ;;  %s1447_s24 = smov 0   ;;  %s1613_s0 = inlined_call_operand.vmem [shape: f32[2,28,128], index: 0, kind: input, shape index: {}]   ;;  %s1614_s1 = inlined_call_operand.vmem [shape: bf16[384,128], index: 1, kind: input, shape index: {}]   ;;  %s1615_s2 = inlined_call_operand.vmem [shape: f32[1,128], index: 2, kind: input, shape index: {}]   ;;  %s1616_s3 = inlined_call_operand.vmem [shape: f32[1,128], index: 3, kind: input, shape index: {}]   ;;  %s1617_s4 = inlined_call_operand.hbm [shape: bf16[384,128], index: 4, kind: input, shape index: {}]   ;;  %s1618_s5 = inlined_call_operand.vmem [shape: f32[1,128], index: 5, kind: input, shape index: {}]   ;;  %s1619_s6 = inlined_call_operand.vmem [shape: f32[1,128], index: 6, kind: input, shape index: {}]   ;;  %s1620_s7 = inlined_call_operand.vmem [shape: f32[2,28,128], index: 7, kind: output, shape index: {}]  }
   0x1 LB: > { %s1453_s25 = sadd.s32 4294967295, %s1401_s24   ;;  %p1096_p0 = scmp.ge.s32.totalorder %s1401_s24, 1  ;;  %s1401_s24 = sphi %s1447_s24, %s18_s24  }
   0x2   : > { %p201_p1 = scmp.lt.s32.totalorder %s1401_s24, 3  ;;  %s1403_s26 = smov [#allocation3]  }
   0x3   : > { %s222_s27 = sshll.u32 %s1403_s26, 4  ;;  %p1621_p3 = scmp.eq.s32.totalorder %s1453_s25, 0  ;;  %s223_s27 = int_to_ptr.vmem [resolvable:$true] %s222_s27 }
   0x4   : > { %p1457_p2 = pnand %p1096_p0, %p201_p1  ;;  %s1363_s9 = scalar_lea.hbm %s1617_s4, 3072 }
   0x5   : > { %p1364_p6 = scmp.ne.s32.totalorder %s1617_s4, %s1363_s9  ;;  %p1370_p10 = scmp.lt.u32.totalorder %s1363_s9, %s1617_s4 }
   0x6   : > { %s1623_s28 = scalar_select %p1457_p2, 1, 0 }
   0x7   : > { %p1281_p4 = pneg %p1457_p2 }
   0x9   : > { %p1466_p5 = pnand %p1621_p3, %p1281_p4 }
   0xb   : > { %p1365_p7 = pneg %p1466_p5 }
   0xd   : > { %p1366_p8 = pnand %p1365_p7, %p1364_p6 }
   0xf   : > { %p1367_p9 = pneg %p1366_p8 }
  0x11   : > { %p1372_p11 = pnand %p1370_p10, %p1367_p9 }
  0x13   : > { %1375 = shalt.err (!%p1372_p11)
}
  0x14   : > { %s1376_s14 = scalar_lea.vmem %s223_s27, 3072  ;;  %p1384_p1 = scmp.lt.s32.totalorder %s223_s27, %s223_s27 }
  0x15   : > { %p1377_p12 = scmp.ne.s32.totalorder %s223_s27, %s1376_s14  ;;  %p1385_p4 = scmp.lt.s32.totalorder %s1376_s14, %s1376_s14 }
  0x17   : > { %p1379_p13 = pnand %p1377_p12, %p1365_p7  ;;  %p1386_p3 = por %p1385_p4, %p1384_p1 }
  0x19   : > { %p1380_p0 = pneg %p1379_p13 }
  0x1b   : > { %p1387_p2 = pnand %p1386_p3, %p1380_p0 }
  0x1d   : > { %1390 = shalt.err (!%p1387_p2)
}
  0x1e   : > { %s1404_s15 = smov 64   ;;  %s1405_s16 = smov 4  }
  0x1f   : > { %1284 = dma.hbm_to_vmem [thread:$0]  (!%p1466_p5), %s1617_s4, 3072, %s223_s27, [#allocation4], %s1404_s15, %s1404_s15, %s1405_s16  }
  0x20   : > { %p1625_p6 = scmp.ne.s32.totalorder %s1623_s28, 0 }
  0x21   : > { %p1626_p8 = scmp.eq.s32.totalorder (!%p1625_p6), %s1453_s25, 0 }
  0x22   : > { %252 = sbr.rel (%p1625_p6) target bundleno = 581 (0x245), region = 48 }
  0x29   : > { %1396 = dma.done.wait (%p1626_p8), [#allocation4], 3072   ;;  %p1627_p7 = pmov %p1626_p8 }
  0x2a   : > { %v1406_v0 = vmov 0.0   ;;  %v1299_v1 = vld [vmem:[%s1614_s1 + $0x40] sm:$0xff]   ;;  %v1302_v4 = vld [vmem:[%s1614_s1 + $0x48] sm:$0xff]   ;;  %v1305_v7 = vld [vmem:[%s1614_s1 + $0x50] sm:$0xff]   ;;  %p284_p2 = scmp.lt.s32.totalorder %s1453_s25, 1 }
  0x2b   : > { %1398 = vsyncadd (%p1627_p7), [#allocation4], 4294964224  ;;  %295 = vst [vmem:[#allocation2] sm:$0xff] %v1406_v0  ;;  %v1300_v2 = vld [vmem:[%s1614_s1 + $0x80] sm:$0xff]   ;;  %1161 = vmatprep.subr.bf16.mxu0 %v1299_v1  ;;  %v1303_v5 = vld [vmem:[%s1614_s1 + $0x88] sm:$0xff]  }
  0x2c   : > { %299 = vst [vmem:[#allocation2 + $0x20] sm:$0xff] %v1406_v0  ;;  %v1301_v3 = vld [vmem:[%s1614_s1] sm:$0xff]   ;;  %1237 = vmatprep.subr.bf16.mxu1 %v1300_v2  ;;  %v1304_v6 = vld [vmem:[%s1614_s1 + $0x8] sm:$0xff]   ;;  %v1306_v8 = vld [vmem:[%s1614_s1 + $0x90] sm:$0xff]   ;;  %s1629_s25 = smov (!%p284_p2, %s1453_s25), 1 }
  0x2d   : > { %1162 = vmatpush3.bf16.msra.mxu0 %v1301_v3  ;;  %1238 = vmatpush3.bf16.msra.mxu1 %v1300_v2  ;;  %v1307_v9 = vld [vmem:[%s1614_s1 + $0x10] sm:$0xff]   ;;  %v1308_v10 = vld [vmem:[%s1614_s1 + $0x58] sm:$0xff]   ;;  %v1311_v13 = vld [vmem:[%s1614_s1 + $0x60] sm:$0xff]   ;;  %s1159_s11 = sshll.u32 %s1629_s25, 5 }
  0x2e   : > { %1163 = vmatprep.subr.bf16.mxu0 %v1302_v4  ;;  %1239 = vmatprep.subr.bf16.mxu1 %v1303_v5  ;;  %v1309_v11 = vld [vmem:[%s1614_s1 + $0x98] sm:$0xff]   ;;  %v1312_v14 = vld [vmem:[%s1614_s1 + $0xa0] sm:$0xff]   ;;  %v1314_v16 = vld [vmem:[%s1614_s1 + $0x68] sm:$0xff]   ;;  %s288_s20 = scalar_lea.vmem %s1613_s0, %s1159_s11  ;;  %s293_s19 = scalar_lea.vmem %s1620_s7, %s1159_s11 }
  0x2f   : > { %v1310_v12 = vld [vmem:[%s1614_s1 + $0x18] sm:$0xff]   ;;  %v1313_v15 = vld [vmem:[%s1614_s1 + $0x20] sm:$0xff]   ;;  %v1315_v17 = vld [vmem:[%s1614_s1 + $0xa8] sm:$0xff]  }
  0x30   : > { %v1316_v18 = vld [vmem:[%s1614_s1 + $0x28] sm:$0xff]   ;;  %v1317_v19 = vld [vmem:[%s1614_s1 + $0x70] sm:$0xff]   ;;  %v1320_v22 = vld [vmem:[%s1614_s1 + $0x78] sm:$0xff]  }
  0x31   : > { %1164 = vmatpush3.bf16.msra.mxu0 %v1304_v6  ;;  %1240 = vmatpush3.bf16.msra.mxu1 %v1303_v5  ;;  %v1318_v20 = vld [vmem:[%s1614_s1 + $0xb0] sm:$0xff]   ;;  %v1321_v23 = vld [vmem:[%s1614_s1 + $0xb8] sm:$0xff]   ;;  %v301_v24 = vld [vmem:[%s288_s20] sm:$0xff] }
  0x32   : > { %1165 = vmatprep.subr.bf16.mxu0 %v1305_v7  ;;  %1241 = vmatprep.subr.bf16.mxu1 %v1306_v8  ;;  %v1319_v21 = vld [vmem:[%s1614_s1 + $0x30] sm:$0xff]   ;;  %v302_v25 = vld [vmem:[%s288_s20 + $0x8] sm:$0xff]  ;;  %305 = vst [vmem:[#allocation2 + $0x8] sm:$0xff] %v301_v24  ;;  %v304_v28 = vld [vmem:[%s288_s20 + $0x18] sm:$0xf] }
  0x33   : > { %v303_v26 = vld [vmem:[%s288_s20 + $0x10] sm:$0xff]  ;;  %306 = vst [vmem:[#allocation2 + $0x10] sm:$0xff] %v302_v25  ;;  %v322_v27 = vpack.c.bf16 %v302_v25, %v301_v24  ;;  %v1322_v29 = vld [vmem:[%s1614_s1 + $0x38] sm:$0xff]   ;;  %308 = vst [vmem:[#allocation2 + $0x20] sm:$0xf] %v304_v28 }
  0x34   : > { %307 = vst [vmem:[#allocation2 + $0x18] sm:$0xff] %v303_v26  ;;  %v1323_v44 = vld [vmem:[#allocation3 + $0x40] sm:$0xff]   ;;  %v1325_v46 = vld [vmem:[#allocation3 + $0x48] sm:$0xff]   ;;  %v1328_v49 = vld [vmem:[#allocation3 + $0x50] sm:$0xff]  }
  0x35   : > { %1166 = vmatpush3.bf16.msra.mxu0 %v1307_v9  ;;  %1242 = vmatpush3.bf16.msra.mxu1 %v1306_v8  ;;  %v1324_v45 = vld [vmem:[#allocation3] sm:$0xff]   ;;  %v1326_v47 = vld [vmem:[#allocation3 + $0x8] sm:$0xff]   ;;  %v1329_v50 = vld [vmem:[#allocation3 + $0x10] sm:$0xff]  }
  0x36   : > { %1167 = vmatprep.subr.bf16.mxu0 %v1308_v10  ;;  %1243 = vmatprep.subr.bf16.mxu1 %v1309_v11  ;;  %v1327_v48 = vld [vmem:[#allocation3 + $0x80] sm:$0xff]   ;;  %v1330_v51 = vld [vmem:[#allocation3 + $0x88] sm:$0xff]   ;;  %v1331_v52 = vld [vmem:[#allocation3 + $0x58] sm:$0xff]  }
  0x37   : > { %551 = vmatprep.mubr.bf16.mxu0 %v322_v27  ;;  %v1332_v53 = vld [vmem:[#allocation3 + $0x18] sm:$0xff]   ;;  %v1333_v54 = vld [vmem:[#allocation3 + $0x90] sm:$0xff]   ;;  %v1334_v55 = vld [vmem:[#allocation3 + $0x60] sm:$0xff]  }
  0x38   : > { %v1335_v56 = vld [vmem:[#allocation3 + $0x20] sm:$0xff]   ;;  %v1336_v57 = vld [vmem:[#allocation3 + $0x98] sm:$0xff]   ;;  %v1337_v58 = vld [vmem:[#allocation3 + $0x68] sm:$0xff]  }
  0x39   : > { %1168 = vmatpush3.bf16.msra.mxu0 %v1310_v12  ;;  %1244 = vmatpush3.bf16.msra.mxu1 %v1309_v11  ;;  %v309_v32 = vld [vmem:[#allocation2 + $0x7] sm:$0xff]  ;;  %v1338_v59 = vld [vmem:[#allocation3 + $0x28] sm:$0xff]   ;;  %v1339_v60 = vld [vmem:[#allocation3 + $0xa0] sm:$0xff]  }
  0x3a   : > { %1169 = vmatprep.subr.bf16.mxu0 %v1311_v13  ;;  %1245 = vmatprep.subr.bf16.mxu1 %v1312_v14  ;;  %v317_v30 = vld [vmem:[#allocation2 + $0x9] sm:$0xff]  ;;  %v320_v36 = vld [vmem:[#allocation2 + $0x21] sm:$0xf]  ;;  %v1342_v63 = vld [vmem:[#allocation3 + $0xa8] sm:$0xff]  }
  0x3b   : > { %v318_v31 = vld [vmem:[#allocation2 + $0x11] sm:$0xff]  ;;  %v319_v35 = vld [vmem:[#allocation2 + $0x19] sm:$0xff]  ;;  %v1343_v0 = vld [vmem:[#allocation3 + $0x78] sm:$0xff]  }
  0x3c   : > { %v323_v33 = vpack.c.bf16 %v318_v31, %v317_v30  ;;  %v310_v34 = vld [vmem:[#allocation2 + $0xf] sm:$0xff]  ;;  %v326_v38 = vpack.c.bf16 %v320_v36, %v319_v35  ;;  %v316_v39 = vld [vmem:[#allocation2 + $0x20] sm:$0xf]  ;;  %v311_v41 = vld [vmem:[#allocation2 + $0x17] sm:$0xff] }
  0x3d   : > { %1170 = vmatpush3.bf16.msra.mxu0 %v1313_v15  ;;  %1246 = vmatpush3.bf16.msra.mxu1 %v1312_v14  ;;  %v321_v37 = vpack.c.bf16 %v310_v34, %v309_v32  ;;  %v325_v40 = vpack.c.bf16 %v316_v39, %v303_v26  ;;  %v312_v42 = vld [vmem:[#allocation2 + $0x1f] sm:$0xf]  ;;  %v1344_v1 = vld [vmem:[#allocation3 + $0x38] sm:$0xff]  }
  0x3e   : > { %1171 = vmatprep.subr.bf16.mxu0 %v1314_v16  ;;  %1247 = vmatprep.subr.bf16.mxu1 %v1315_v17  ;;  %v324_v43 = vpack.c.bf16 %v312_v42, %v311_v41  ;;  %v1340_v61 = vld [vmem:[#allocation3 + $0x70] sm:$0xff]   ;;  %v1346_v3 = vld [vmem:[#allocation3 + $0xb8] sm:$0xff]  }
  0x3f   : > { %1253 = vmatprep.mubr.bf16.mxu1 %v323_v33  ;;  %v1341_v62 = vld [vmem:[#allocation3 + $0x30] sm:$0xff]  }
  0x40   : > { %v1345_v2 = vld [vmem:[#allocation3 + $0xb0] sm:$0xff]  }
  0x41   : > { %1172 = vmatpush3.bf16.msra.mxu0 %v1316_v18  ;;  %1248 = vmatpush3.bf16.msra.mxu1 %v1315_v17  ;;  %v1129_v11 = vld [vmem:[%s1615_s2] ss:$0 sm:$0xff] }
  0x42   : > { %1173 = vmatprep.subr.bf16.mxu0 %v1317_v19  ;;  %1249 = vmatprep.subr.bf16.mxu1 %v1318_v20  ;;  %v1130_v16 = vld [vmem:[%s1616_s3] ss:$0 sm:$0xff] }
  0x45   : > { %1174 = vmatpush3.bf16.msra.mxu0 %v1319_v21  ;;  %1250 = vmatpush3.bf16.msra.mxu1 %v1318_v20 }
  0x46   : > { %1175 = vmatprep.subr.bf16.mxu0 %v1320_v22  ;;  %1251 = vmatprep.subr.bf16.mxu1 %v1321_v23 }
  0x49   : > { %1176 = vmatpush3.bf16.msra.mxu0 %v1322_v29  ;;  %1252 = vmatpush3.bf16.msra.mxu1 %v1321_v23 }
  0x4a   : > { %1199 = vmatprep.subr.bf16.mxu0 %v1323_v44  ;;  %1257 = vmatprep.subr.bf16.mxu1 %v1327_v48 }
  0x4c   : > { %552 = vmatmul.mubr.bf16.vlgmr.msra.gmra.mrb[0].mxu0 %v321_v37  ;;  %1254 = vmatmul.mubr.bf16.vlgmr.msra.gmra.mrb[0].mxu1 %v326_v38 }
  0x4d   : > { %559 = vmatprep.mubr.bf16.mxu0 %v325_v40  ;;  %1200 = vmatpush3.bf16.msra.mxu0 %v1324_v45 }
  0x4e   : > { %1201 = vmatprep.subr.bf16.mxu0 %v1325_v46  ;;  %1258 = vmatpush3.bf16.msra.mxu1 %v1327_v48 }
  0x4f   : > { %1259 = vmatprep.subr.bf16.mxu1 %v1330_v51 }
  0x51   : > { %1202 = vmatpush3.bf16.msra.mxu0 %v1326_v47 }
  0x52   : > { %1203 = vmatprep.subr.bf16.mxu0 %v1328_v49  ;;  %1260 = vmatpush3.bf16.msra.mxu1 %v1330_v51 }
  0x53   : > { %1261 = vmatprep.subr.bf16.mxu1 %v1333_v54 }
  0x54   : > { %560 = vmatmul.mubr.bf16.gmra.mrb[4].mxu0 %v324_v43 }
  0x55   : > { %1204 = vmatpush3.bf16.msra.mxu0 %v1329_v50 }
  0x56   : > { %1205 = vmatprep.subr.bf16.mxu0 %v1331_v52  ;;  %1262 = vmatpush3.bf16.msra.mxu1 %v1333_v54 }
  0x57   : > { %1263 = vmatprep.subr.bf16.mxu1 %v1336_v57 }
  0x59   : > { %1206 = vmatpush3.bf16.msra.mxu0 %v1332_v53 }
  0x5a   : > { %1207 = vmatprep.subr.bf16.mxu0 %v1334_v55  ;;  %1264 = vmatpush3.bf16.msra.mxu1 %v1336_v57 }
  0x5b   : > { %1265 = vmatprep.subr.bf16.mxu1 %v1339_v60 }
  0x5d   : > { %1208 = vmatpush3.bf16.msra.mxu0 %v1335_v56 }
  0x5e   : > { %1209 = vmatprep.subr.bf16.mxu0 %v1337_v58  ;;  %1266 = vmatpush3.bf16.msra.mxu1 %v1339_v60 }
  0x5f   : > { %1267 = vmatprep.subr.bf16.mxu1 %v1342_v63 }
  0x61   : > { %1210 = vmatpush3.bf16.msra.mxu0 %v1338_v59 }
  0x62   : > { %1211 = vmatprep.subr.bf16.mxu0 %v1340_v61  ;;  %1268 = vmatpush3.bf16.msra.mxu1 %v1342_v63 }
  0x63   : > { %1269 = vmatprep.subr.bf16.mxu1 %v1345_v2 }
  0x65   : > { %1212 = vmatpush3.bf16.msra.mxu0 %v1341_v62 }
  0x66   : > { %1213 = vmatprep.subr.bf16.mxu0 %v1343_v0  ;;  %1270 = vmatpush3.bf16.msra.mxu1 %v1345_v2 }
  0x67   : > { %1271 = vmatprep.subr.bf16.mxu1 %v1346_v3 }
  0x69   : > { %1214 = vmatpush3.bf16.msra.mxu0 %v1344_v1 }
  0x6a   : > { %1272 = vmatpush3.bf16.msra.mxu1 %v1346_v3 }
 0x11f   : > { %v1177_v4 = vpop.f32.mrb[0].mxu0  ;;  %v1255_v5 = vpop.f32.mrb[0].mxu1 }
 0x120   : > { %v1178_v6 = vpop.f32.mrb[1].mxu0  ;;  %v602_v7 = vpop.f32.mrb[1].mxu1 }
 0x121   : > { %v1179_v8 = vadd.f32 %v1178_v6, %v1177_v4  ;;  %v1180_v9 = vpop.f32.mrb[2].mxu0  ;;  %v1256_v10 = vpop.f32.mrb[2].mxu1 }
 0x122   : > { %v1181_v12 = vpop.f32.mrb[3].mxu0  ;;  %v605_v13 = vpop.f32.mrb[3].mxu1 }
 0x123   : > { %v603_v14 = vadd.f32 %v1179_v8, %v602_v7  ;;  %v1182_v15 = vadd.f32 %v1181_v12, %v1180_v9 }
 0x125   : > { %v624_v17 = vmul.f32 %v1129_v11, %v603_v14  ;;  %v606_v18 = vadd.f32 %v1182_v15, %v605_v13  ;;  %v1155_v14 = vld [vmem:[%s1618_s5] ss:$0 sm:$0xff] }
 0x127   : > { %v635_v19 = vadd.f32 %v1130_v16, %v624_v17  ;;  %v625_v20 = vmul.f32 %v1129_v11, %v606_v18  ;;  %v1183_v21 = vpop.f32.mrb[4].mxu0  ;;  %v1156_v18 = vld [vmem:[%s1619_s6] ss:$0 sm:$0xff] }
 0x128   : > { %v1184_v22 = vpop.f32.mrb[5].mxu0 }
 0x129   : > { %v644_v23 = vmul.f32 0.70710677, %v635_v19  ;;  %v636_v24 = vadd.f32 %v1130_v16, %v625_v20  ;;  %v1185_v25 = vadd.f32 %v1184_v22, %v1183_v21  ;;  %v1186_v26 = vpop.f32.mrb[6].mxu0  ;;  %v639_v39 = vmul.f32 0.5, %v635_v19 }
 0x12a   : > { %v1187_v27 = vpop.f32.mrb[7].mxu0 }
 0x12b   : > { %1347 = verf.f32 %v644_v23  ;;  %v645_v28 = vmul.f32 0.70710677, %v636_v24  ;;  %v611_v29 = vadd.f32 %v1255_v5, %v1185_v25  ;;  %v1188_v30 = vadd.f32 %v1187_v27, %v1186_v26 }
 0x12c   : > { %v640_v43 = vmul.f32 0.5, %v636_v24 }
 0x12d   : > { %1349 = verf.f32 %v645_v28  ;;  %v626_v31 = vmul.f32 %v1129_v11, %v611_v29  ;;  %v614_v32 = vadd.f32 %v1256_v10, %v1188_v30 }
 0x12f   : > { %v637_v33 = vadd.f32 %v1130_v16, %v626_v31  ;;  %v627_v34 = vmul.f32 %v1129_v11, %v614_v32 }
 0x131   : > { %v646_v35 = vmul.f32 0.70710677, %v637_v33  ;;  %v638_v36 = vadd.f32 %v1130_v16, %v627_v34  ;;  %v641_v48 = vmul.f32 0.5, %v637_v33 }
 0x133   : > { %1351 = verf.f32 %v646_v35  ;;  %v647_v37 = vmul.f32 0.70710677, %v638_v36  ;;  %v642_v52 = vmul.f32 0.5, %v638_v36 }
 0x135   : > { %v1348_v38 = vpop.eup %1347  ;;  %1353 = verf.f32 %v647_v37 }
 0x136   : > { %v652_v40 = vadd.f32 1.0, %v1348_v38 }
 0x137   : > { %v1350_v41 = vpop.eup %1349 }
 0x138   : > { %v1580_v42 = vmul.f32 %v652_v40, %v639_v39  ;;  %v653_v44 = vadd.f32 1.0, %v1350_v41 }
 0x13a   : > { %660 = vst [vmem:[#allocation2 + $0x8] sm:$0xff] %v1580_v42  ;;  %v1583_v45 = vmul.f32 %v653_v44, %v640_v43 }
 0x13c   : > { %661 = vst [vmem:[#allocation2 + $0x10] sm:$0xff] %v1583_v45  ;;  %v677_v46 = vpack.c.bf16 %v1583_v45, %v1580_v42 }
 0x13d   : > { %v1352_v47 = vpop.eup %1351 }
 0x13e   : > { %v654_v49 = vadd.f32 1.0, %v1352_v47  ;;  %906 = vmatprep.mubr.bf16.mxu0 %v677_v46 }
 0x13f   : > { %v1354_v50 = vpop.eup %1353 }
 0x140   : > { %v1588_v51 = vmul.f32 %v654_v49, %v641_v48  ;;  %v655_v53 = vadd.f32 1.0, %v1354_v50 }
 0x141   : > { %v664_v55 = vld [vmem:[#allocation2 + $0x7] sm:$0xff] }
 0x142   : > { %662 = vst [vmem:[#allocation2 + $0x18] sm:$0xff] %v1588_v51  ;;  %v1591_v54 = vmul.f32 %v655_v53, %v642_v52 }
 0x143   : > { %v665_v56 = vld [vmem:[#allocation2 + $0xf] sm:$0xff] }
 0x144   : > { %v676_v57 = vpack.c.bf16 %v665_v56, %v664_v55  ;;  %663 = vst [vmem:[#allocation2 + $0x20] sm:$0xf] %v1591_v54  ;;  %v672_v58 = vld [vmem:[#allocation2 + $0x9] sm:$0xff] }
 0x146   : > { %907 = vmatmul.mubr.bf16.vlgmr.msra.gmra.mrb[8].mxu0 %v676_v57 }
 0x149   : > { %v673_v59 = vld [vmem:[#allocation2 + $0x11] sm:$0xff] }
 0x14a   : > { %v678_v60 = vpack.c.bf16 %v673_v59, %v672_v58  ;;  %v666_v2 = vld [vmem:[#allocation2 + $0x17] sm:$0xff] }
 0x14b   : > { %v671_v61 = vld [vmem:[#allocation2 + $0x20] sm:$0xf] }
 0x14c   : > { %1273 = vmatprep.mubr.bf16.mxu1 %v678_v60  ;;  %v674_v62 = vld [vmem:[#allocation2 + $0x19] sm:$0xff]  ;;  %v675_v63 = vld [vmem:[#allocation2 + $0x21] sm:$0xf]  ;;  %v680_v0 = vpack.c.bf16 %v671_v61, %v1588_v51 }
 0x14d   : > { %v681_v1 = vpack.c.bf16 %v675_v63, %v674_v62  ;;  %v667_v3 = vld [vmem:[#allocation2 + $0x1f] sm:$0xf] }
 0x14e   : > { %v679_v4 = vpack.c.bf16 %v667_v3, %v666_v2  ;;  %914 = vmatprep.mubr.bf16.mxu0 %v680_v0 }
 0x14f   : > { %1274 = vmatmul.mubr.bf16.vlgmr.msra.gmra.mrb[4].mxu1 %v681_v1 }
 0x150   : > { %915 = vmatmul.mubr.bf16.gmra.mrb[12].mxu0 %v679_v4 }
 0x219   : > { %v1215_v5 = vpop.f32.mrb[8].mxu0 }
 0x21a   : > { %v1216_v6 = vpop.f32.mrb[9].mxu0 }
 0x21b   : > { %v1217_v7 = vadd.f32 %v1216_v6, %v1215_v5  ;;  %v1218_v8 = vpop.f32.mrb[10].mxu0 }
 0x21c   : > { %v1219_v9 = vpop.f32.mrb[11].mxu0 }
 0x21d   : > { %v1220_v10 = vadd.f32 %v1219_v9, %v1218_v8 }
 0x222   : > { %v1275_v11 = vpop.f32.mrb[4].mxu1 }
 0x223   : > { %v1221_v12 = vpop.f32.mrb[12].mxu0  ;;  %v957_v13 = vpop.f32.mrb[5].mxu1 }
 0x224   : > { %v958_v15 = vadd.f32 %v1217_v7, %v957_v13  ;;  %v1222_v16 = vpop.f32.mrb[13].mxu0  ;;  %v1276_v17 = vpop.f32.mrb[6].mxu1 }
 0x225   : > { %v1223_v19 = vadd.f32 %v1222_v16, %v1221_v12  ;;  %v1224_v20 = vpop.f32.mrb[14].mxu0  ;;  %v960_v21 = vpop.f32.mrb[7].mxu1 }
 0x226   : > { %v979_v22 = vmul.f32 %v1155_v14, %v958_v15  ;;  %v961_v23 = vadd.f32 %v1220_v10, %v960_v21  ;;  %v1225_v24 = vpop.f32.mrb[15].mxu0 }
 0x227   : > { %v966_v25 = vadd.f32 %v1275_v11, %v1223_v19  ;;  %v1226_v26 = vadd.f32 %v1225_v24, %v1224_v20 }
 0x228   : > { %v990_v27 = vadd.f32 %v1156_v18, %v979_v22  ;;  %v980_v28 = vmul.f32 %v1155_v14, %v961_v23 }
 0x229   : > { %v981_v29 = vmul.f32 %v1155_v14, %v966_v25  ;;  %v969_v30 = vadd.f32 %v1276_v17, %v1226_v26 }
 0x22a   : > { %v998_v31 = vmul.f32 0.70710677, %v990_v27  ;;  %v991_v32 = vadd.f32 %v1156_v18, %v980_v28  ;;  %v994_v40 = vmul.f32 0.5, %v990_v27 }
 0x22b   : > { %v992_v33 = vadd.f32 %v1156_v18, %v981_v29  ;;  %v982_v34 = vmul.f32 %v1155_v14, %v969_v30 }
 0x22c   : > { %1355 = verf.f32 %v998_v31  ;;  %v999_v35 = vmul.f32 0.70710677, %v991_v32  ;;  %v995_v47 = vmul.f32 0.5, %v991_v32 }
 0x22d   : > { %v1000_v36 = vmul.f32 0.70710677, %v992_v33  ;;  %v993_v37 = vadd.f32 %v1156_v18, %v982_v34  ;;  %v996_v49 = vmul.f32 0.5, %v992_v33 }
 0x22e   : > { %1357 = verf.f32 %v999_v35 }
 0x22f   : > { %1359 = verf.f32 %v1000_v36  ;;  %v1001_v38 = vmul.f32 0.70710677, %v993_v37  ;;  %v997_v57 = vmul.f32 0.5, %v993_v37 }
 0x231   : > { %1361 = verf.f32 %v1001_v38 }
 0x236   : > { %v1356_v39 = vpop.eup %1355 }
 0x237   : > { %v1006_v41 = vadd.f32 1.0, %v1356_v39 }
 0x238   : > { %v1358_v43 = vpop.eup %1357 }
 0x239   : > { %v1360_v44 = vpop.eup %1359  ;;  %v1010_v46 = vmul.f32 %v1006_v41, %v994_v40  ;;  %v1007_v48 = vadd.f32 1.0, %v1358_v43 }
 0x23a   : > { %v1008_v50 = vadd.f32 1.0, %v1360_v44 }
 0x23b   : > { %v1362_v52 = vpop.eup %1361  ;;  %v1014_v53 = vadd.f32 %v1010_v46, %v1580_v42  ;;  %v1011_v55 = vmul.f32 %v1007_v48, %v995_v47 }
 0x23c   : > { %v1012_v56 = vmul.f32 %v1008_v50, %v996_v49  ;;  %v1009_v58 = vadd.f32 1.0, %v1362_v52 }
 0x23d   : > { %v1019_v59 = vmul.f32 0.7072136, %v1014_v53  ;;  %v1015_v60 = vadd.f32 %v1011_v55, %v1583_v45 }
 0x23e   : > { %v1016_v61 = vadd.f32 %v1012_v56, %v1588_v51  ;;  %v1013_v62 = vmul.f32 %v1009_v58, %v997_v57 }
 0x23f   : > { %1023 = vst [vmem:[%s293_s19] sm:$0xff] %v1019_v59  ;;  %v1020_v63 = vmul.f32 0.7072136, %v1015_v60 }
 0x240   : > { %v1021_v0 = vmul.f32 0.7072136, %v1016_v61  ;;  %v1017_v42 = vadd.f32 %v1013_v62, %v1591_v54 }
 0x241   : > { %1024 = vst [vmem:[%s293_s19 + $0x8] sm:$0xff] %v1020_v63 }
 0x242   : > { %1025 = vst [vmem:[%s293_s19 + $0x10] sm:$0xff] %v1021_v0  ;;  %v1022_v1 = vmul.f32 0.7072136, %v1017_v42 }
 0x244   : > { %1026 = vst [vmem:[%s293_s19 + $0x18] sm:$0xf] %v1022_v1 }
 0x245 PF: > { %s18_s24 = sadd.s32 1, %s1401_s24  }
 0x246   : > { %p15_p3 = scmp.ge.s32.totalorder %s18_s24, 4  }
 0x248   :  { %17 = sbr.rel (!%p15_p3) target bundleno = 1 (0x1), region = 83 }
 0x24f   :  { %1048 = vsyncpa [#allocation4], 1 }
 0x250   :  { %1050 = vsyncpa [#allocation4 + $0x1], 1 }

</bundles_post_ra>
